<compile_context>
chip_gen: v6e
topology: v6e:2x2x1
jax: 0.10.0
libtpu: 0.0.40
codegen_flags: <defaults>
</compile_context>

<pallas_src>
import math
import functools

import jax
import jax.numpy as jnp
from jax.experimental import pallas as pl
from jax.experimental.pallas import tpu as pltpu


def build_pe_table(d_model: int, max_len: int = 4096) -> jnp.ndarray:
    """Deterministic sin/cos positional-encoding buffer, shape (1, max_len, d_model)."""
    position = jnp.arange(0, max_len, dtype=jnp.float32)[:, None]            # (L, 1)
    div_term = jnp.exp(
        jnp.arange(0, d_model, 2, dtype=jnp.float32) * (-math.log(10000.0) / d_model)
    )                                                                        # (D/2,)
    pe = jnp.zeros((max_len, d_model), dtype=jnp.float32)
    pe = pe.at[:, 0::2].set(jnp.sin(position * div_term))
    pe = pe.at[:, 1::2].set(jnp.cos(position * div_term))
    return pe[None, :, :]                                                    # (1, L, D)


def _mix32(v):
    """lowbias32-style uint32 mixer — pure integer VPU ops (xor/shift/mul)."""
    v = v ^ (v >> 16)
    v = v * jnp.uint32(0x7FEB352D)
    v = v ^ (v >> 15)
    v = v * jnp.uint32(0x846CA68B)
    v = v ^ (v >> 16)
    return v


def _pe_dropout_kernel(seed_ref, x_ref, pe_ref, o_ref, *,
                       p: float, training: bool,
                       tile_cols: int, total_cols: int):
    # x_ref : (1, 1, TC) tile of the flattened activation for batch element b
    # pe_ref: (1, 1, TC) tile of the flattened PE table (shared across b)
    val = x_ref[...].astype(jnp.float32) + pe_ref[...].astype(jnp.float32)

    if training and p > 0.0:
        if p >= 1.0:
            val = jnp.zeros_like(val)
        else:
            c = pl.program_id(0)            # column-tile index
            b = pl.program_id(1)            # batch index
            # Stateless counter-based RNG: hash(global element index, seed).
            local = jax.lax.broadcasted_iota(jnp.int32, val.shape, 2).astype(jnp.uint32)
            col = c.astype(jnp.uint32) * jnp.uint32(tile_cols) + local
            idx = b.astype(jnp.uint32) * jnp.uint32(total_cols) + col
            key = _mix32(seed_ref[0].astype(jnp.uint32) * jnp.uint32(0x9E3779B9))
            bits = _mix32(idx ^ key)
            # Integer threshold compare on the top 24 bits:
            # keep prob = 1 - p (up to 2^-24 quantization).  No shift-to-float,
            # no convert, no fmul.
            thresh = int(round(p * float(1 << 24)))
            keep = (bits >> 8).astype(jnp.int32) >= jnp.int32(thresh)
            val = jnp.where(keep, val * jnp.float32(1.0 / (1.0 - p)),
                            jnp.float32(0.0))

    o_ref[...] = val.astype(o_ref.dtype)


def positional_encoding_forward(x, pe_table, *, p: float = 0.1,
                                training: bool = False, seed: int = 0):
    """x: (B, S, D) float array.  Returns dropout(x + pe_table[:, :S])."""
    B, S, D = x.shape
    _, max_len, Dp = pe_table.shape
    assert Dp == D and S <= max_len

    total_cols = S * D
    # Lane-dense flattened views — metadata-only reshapes, no extra HBM pass.
    x_flat = x.reshape(B, 1, total_cols)

    # Tile over the flattened (seq * d_model) axis: multiple of 128 lanes,
    # ~1 MiB f32 per tile -> comfortably inside the scoped-VMEM defaults of
    # v5e (16 MiB) / v6e (32 MiB) / v7x (32 of 64 MiB) with double buffering.
    target_elems = 256 * 1024
    tc = min(total_cols, target_elems)
    tc = (tc // 128) * 128
    if tc >= 128:
        # Pass the FULL pe buffer; the [:S] window falls out of the column
        # tiling because pe is row-major over (seq, d_model) exactly like x.
        pe_flat = pe_table.reshape(1, 1, max_len * D)
    else:
        # TODO(synk): S*D < 128 cannot form a lane-dense multiple-of-128 tile;
        # fall back to one full-width (masked-store) block per batch element.
        tc = total_cols
        pe_flat = pe_table[:, :S, :].reshape(1, 1, total_cols)

    grid_c = pl.cdiv(total_cols, tc)
    seed_arr = jnp.array([seed], dtype=jnp.int32)

    kernel = functools.partial(_pe_dropout_kernel, p=float(p),
                               training=bool(training),
                               tile_cols=tc, total_cols=total_cols)

    out_flat = pl.pallas_call(
        kernel,
        out_shape=jax.ShapeDtypeStruct((B, 1, total_cols), x.dtype),
        grid_spec=pltpu.PrefetchScalarGridSpec(
            num_scalar_prefetch=1,                   # seed -> SMEM
            grid=(grid_c, B),                        # batch innermost: PE tile stays VMEM-resident
            in_specs=[
                pl.BlockSpec((1, 1, tc), lambda c, b, seed: (b, 0, c)),   # x
                pl.BlockSpec((1, 1, tc), lambda c, b, seed: (0, 0, c)),   # pe (b-independent)
            ],
            out_specs=pl.BlockSpec((1, 1, tc), lambda c, b, seed: (b, 0, c)),
        ),
        compiler_params=pltpu.CompilerParams(
            # Stateless RNG -> every grid step independent; parallel on both
            # axes lets Mosaic shard work across v7x's two TensorCores.
            dimension_semantics=("parallel", "parallel"),
        ),
    )(seed_arr, x_flat, pe_flat)

    return out_flat.reshape(B, S, D)


if __name__ == "__main__":
    B, S, D = 2, 8, 32          # small shapes: batch=2, seq=8, d_model=32
    MAX_LEN = 4096

    key = jax.random.PRNGKey(0)
    x = jax.random.normal(key, (B, S, D), dtype=jnp.float32)

    pe_table = build_pe_table(D, MAX_LEN)
    ref = x + pe_table[:, :S, :]

    # Eval mode (dropout is identity) — deterministic, check against reference.
    out_eval = positional_encoding_forward(x, pe_table, p=0.1, training=False)
    out_eval = jax.block_until_ready(out_eval)
    assert out_eval.shape == (B, S, D)
    assert jnp.allclose(out_eval, ref, atol=1e-5, rtol=1e-5), "mismatch vs reference"

    # Training mode — exercise in-kernel dropout.  Each output element must be
    # either 0 (dropped) or (x + pe) / (1 - p) (kept, inverted scaling).
    p = 0.1
    out_train = positional_encoding_forward(x, pe_table, p=p, training=True, seed=123)
    out_train = jax.block_until_ready(out_train)
    assert out_train.shape == (B, S, D)
    scaled = ref / (1.0 - p)
    ok = jnp.isclose(out_train, 0.0, atol=1e-6) | jnp.isclose(
        out_train, scaled, atol=1e-4, rtol=1e-4)
    assert bool(jnp.all(ok)), "training output is not {0, (x+pe)/(1-p)}"

    print("KERNEL_OK")
</pallas_src>

<mosaic_0001>
module attributes {stable_mosaic.version = 11 : i64} {
  func.func @_pe_dropout_kernel(%arg0: i32, %arg1: i32, %arg2: memref<1xi32, #tpu.memory_space<smem>>, %arg3: memref<1x1x256xf32, #tpu.memory_space<vmem>>, %arg4: memref<1x1x256xf32, #tpu.memory_space<vmem>>, %arg5: memref<1x1x256xf32, #tpu.memory_space<vmem>>) attributes {dimension_semantics = [#tpu.dimension_semantics<parallel>, #tpu.dimension_semantics<parallel>], iteration_bounds = array<i64: 1, 2>, scalar_prefetch = 1 : i64, scratch_operands = 0 : i64, tpu.core_type = #tpu.core_type<tc>, window_params = [{transform_indices = @transform_0, window_bounds = array<i64: 1, 1, 256>}, {transform_indices = @transform_1, window_bounds = array<i64: 1, 1, 256>}, {transform_indices = @transform_2, window_bounds = array<i64: 1, 1, 256>}]} {
    %c0 = arith.constant 0 : index
    %c0_0 = arith.constant 0 : index
    %c0_1 = arith.constant 0 : index
    %0 = vector.load %arg3[%c0, %c0_0, %c0_1] : memref<1x1x256xf32, #tpu.memory_space<vmem>>, vector<1x1x256xf32>
    %c0_2 = arith.constant 0 : index
    %c0_3 = arith.constant 0 : index
    %c0_4 = arith.constant 0 : index
    %1 = vector.load %arg4[%c0_2, %c0_3, %c0_4] : memref<1x1x256xf32, #tpu.memory_space<vmem>>, vector<1x1x256xf32>
    %2 = arith.addf %0, %1 : vector<1x1x256xf32>
    %c0_5 = arith.constant 0 : index
    %c0_6 = arith.constant 0 : index
    %c0_7 = arith.constant 0 : index
    %3 = vector.load %arg5[%c0_5, %c0_6, %c0_7] : memref<1x1x256xf32, #tpu.memory_space<vmem>>, vector<1x1x256xf32>
    tpu.vector_store %arg5[%c0_5, %c0_6, %c0_7], %2 {strides = array<i32>} : memref<1x1x256xf32, #tpu.memory_space<vmem>>, vector<1x1x256xf32>,
    return
  }
  func.func @transform_0(%arg0: i32, %arg1: i32, %arg2: memref<1xi32, #tpu.memory_space<smem>>) -> (i32, i32, i32) {
    %c0_i32 = arith.constant 0 : i32
    %c0_i32_0 = arith.constant 0 : i32
    return %arg1, %c0_i32, %arg0 : i32, i32, i32
  }
  func.func @transform_1(%arg0: i32, %arg1: i32, %arg2: memref<1xi32, #tpu.memory_space<smem>>) -> (i32, i32, i32) {
    %c0_i32 = arith.constant 0 : i32
    %c0_i32_0 = arith.constant 0 : i32
    %c0_i32_1 = arith.constant 0 : i32
    return %c0_i32, %c0_i32_0, %arg0 : i32, i32, i32
  }
  func.func @transform_2(%arg0: i32, %arg1: i32, %arg2: memref<1xi32, #tpu.memory_space<smem>>) -> (i32, i32, i32) {
    %c0_i32 = arith.constant 0 : i32
    %c0_i32_0 = arith.constant 0 : i32
    return %arg1, %c0_i32, %arg0 : i32, i32, i32
  }
}

</mosaic_0001>

<bundles_post_ra>
// kernel: tpu_custom_call.1
= control target key start
LH: loop header
LB: loop body
LE: loop exit
PB: predicated region body
PF: predicated region fallthrough
CT: control target
= control target key end

     0   :  { %9 = vsyncpa [#allocation5], 0  ;;  %s741_s0 = inlined_call_operand.<no memory space> [shape: s32[1], index: 0, kind: input, shape index: {}]   ;;  %s742_s1 = inlined_call_operand.hbm [shape: f32[2,1,256], index: 1, kind: input, shape index: {}]   ;;  %s743_s2 = inlined_call_operand.hbm [shape: f32[1,1,131072], index: 2, kind: input, shape index: {}]   ;;  %s744_s3 = inlined_call_operand.hbm [shape: f32[2,1,256], index: 3, kind: output, shape index: {}]  }
   0x1   :  { %11 = vsyncpa [#allocation5 + $0x1], 0 }
   0x2   :  { %12 = vsyncpa [#allocation8], 0 }
   0x3   :  { %13 = vsyncpa [#allocation6], 0 }
   0x4   :  { %15 = vsyncpa [#allocation6 + $0x1], 0  ;;  %s580_s12 = smov 0   ;;  %s582_s13 = smov 0  }
   0x5   :  { %s584_s14 = smov 0   ;;  %s586_s0 = smov 0  }
   0x6   :  { %s588_s15 = smov 0   ;;  %s590_s16 = smov 0  }
   0x7 LB: > { %s325_s17 = sadd.s32 4294967295, %s555_s16   ;;  %s326_s18 = sadd.s32 4294967294, %s555_s16   ;;  %s555_s16 = sphi %s590_s16, %s21_s16   ;;  %s551_s15 = sphi %s588_s15, %s761_s15   ;;  %s547_s0 = sphi %s586_s0, %s760_s0   ;;  %s543_s14 = sphi %s584_s14, %s759_s14   ;;  %s539_s13 = sphi %s582_s13, %s758_s13   ;;  %s535_s12 = sphi %s580_s12, %s757_s12  }
   0x8   : > { %p55_p0 = scmp.ne.s32.totalorder %s539_s13, %s535_s12  ;;  %p614_p1 = scmp.eq.s32.totalorder %s325_s17, 0 }
   0x9   : > { %p618_p2 = scmp.eq.s32.totalorder %s325_s17, 1  ;;  %p113_p3 = scmp.eq.s32.totalorder %s326_s18, 1 }
   0xa   : > { %p624_p4 = por %p614_p1, %p55_p0  ;;  %p327_p5 = scmp.ge.s32.totalorder %s555_s16, 1 }
   0xb   : > { %p629_p6 = por %p113_p3, %p55_p0  ;;  %p120_p7 = scmp.lt.s32.totalorder %s555_s16, 3 }
   0xc   : > { %s748_s21 = scalar_select %p624_p4, 1, 0 }
   0xd   : > { %s749_s22 = scalar_select %p629_p6, 1, 0 }
   0xe   : > { %p634_p8 = pnand %p327_p5, %p120_p7  ;;  %s557_s24 = smov [#allocation7]  }
   0xf   : > { %s136_s25 = sshll.u32 %s557_s24, 4  ;;  %s30_s27 = sadd.s32 1, %s551_s15  ;;  %s137_s25 = int_to_ptr.vmem [resolvable:$true] %s136_s25 }
  0x10   : > { %p352_p10 = pneg %p634_p8  ;;  %s42_s28 = sadd.s32 1, %s543_s14 }
  0x11   : > { %p31_p12 = scmp.ge.s32.totalorder %s30_s27, 2  ;;  %s428_s29 = scalar_lea.vmem %s137_s25, 32 }
  0x12   : > { %p643_p11 = pnand %p352_p10, %p614_p1  ;;  %p429_p0 = scmp.ne.s32.totalorder %s137_s25, %s428_s29 }
  0x13   : > { %p436_p7 = scmp.lt.s32.totalorder %s137_s25, %s137_s25  ;;  %p437_p6 = scmp.lt.s32.totalorder %s428_s29, %s428_s29 }
  0x14   : > { %p419_p13 = pneg %p643_p11 }
  0x15   : > { %p438_p9 = por %p437_p6, %p436_p7 }
  0x16   : > { %p431_p3 = pnand %p429_p0, %p419_p13 }
  0x18   : > { %p432_p5 = pneg %p431_p3 }
  0x1a   : > { %p439_p4 = pnand %p438_p9, %p432_p5 }
  0x1c   : > { %442 = shalt.err (!%p439_p4)
}
  0x1d   : > { %355 = dma.hbm_to_vmem [thread:$0]  (!%p643_p11), %s743_s2, 32, %s137_s25, [#allocation8]  }
  0x1e   : > { %s763_s27 = smov (%p31_p12, %s30_s27), 0  ;;  %p49_p6 = scmp.ne.s32.totalorder %s543_s14, %s539_s13 }
  0x1f   : > { %p50_p4 = scmp.eq.s32.totalorder %s555_s16, 0  ;;  %s37_s5 = ssub.s32 %s551_s15, %s763_s27 }
  0x20   : > { %p365_p9 = scmp.lt.s32.totalorder %s555_s16, 2  ;;  %p40_p10 = scmp.eq.s32.totalorder %s37_s5, 0 }
  0x21   : > { %p51_p13 = por %p50_p4, %p49_p6  ;;  %p666_p0 = por %p618_p2, %p49_p6 }
  0x22   : > { %s147_s7 = sand.u32 1, %s543_s14   ;;  %s342_s10 = sshll.u32 %s551_s15, 5 }
  0x23   : > { %s672_s8 = scalar_select %p40_p10, %s543_s14, %s42_s28  }
  0x24   : > { %s330_s9 = sshll.u32 %s147_s7, 1  ;;  %s159_s18 = scalar_lea.hbm %s742_s1, %s342_s10 }
  0x25   : > { %s151_s24 = scalar_lea.vmem [#allocation4], %s330_s9  ;;  %p678_p11 = pnand %p365_p9, %p51_p13 }
  0x26   : > { %s161_s25 = sshll.u32 %s151_s24, 4  ;;  %s148_s20 = scalar_lea.sflag [#allocation5], %s147_s7  ;;  %s162_s25 = int_to_ptr.vmem [resolvable:$true] %s161_s25 }
  0x27   : > { %p445_p2 = pneg %p678_p11  ;;  %s456_s29 = scalar_lea.vmem %s162_s25, 32 }
  0x28   : > { %p457_p12 = scmp.ne.s32.totalorder %s162_s25, %s456_s29  ;;  %s558_s28 = smov [#allocation4]  }
  0x29   : > { %s461_s30 = sshll.u32 %s558_s28, 4  ;;  %s462_s30 = int_to_ptr.vmem [resolvable:$false] %s461_s30 }
  0x2a   : > { %p459_p3 = pnand %p457_p12, %p445_p2  ;;  %s463_s4 = scalar_lea.vmem %s462_s30, 64 }
  0x2b   : > { %p464_p7 = scmp.lt.s32.totalorder %s162_s25, %s462_s30  ;;  %p465_p6 = scmp.lt.s32.totalorder %s463_s4, %s456_s29 }
  0x2c   : > { %p460_p5 = pneg %p459_p3 }
  0x2d   : > { %p466_p4 = por %p465_p6, %p464_p7 }
  0x2f   : > { %p467_p10 = pnand %p466_p4, %p460_p5 }
  0x31   : > { %470 = shalt.err (!%p467_p10)
}
  0x32   : > { %359 = dma.hbm_to_vmem [thread:$0]  (!%p678_p11), %s159_s18, 32, %s162_s25, %s148_s20  }
  0x33   : > { %170 = sbr.rel (%p634_p8) target bundleno = 83 (0x53), region = 28  ;;  %s689_s5 = sand.u32 (!%p634_p8), 1, %s539_s13  }
  0x34   : > { %s334_s7 = sshll.u32 (!%p634_p8), %s689_s5, 1  ;;  %s173_s9 = scalar_lea.sflag (!%p634_p8), [#allocation5], %s689_s5 }
  0x35   : > { %s176_s10 = scalar_lea.vmem (!%p634_p8), [#allocation4], %s334_s7  ;;  %p754_p9 = scmp.ne.s32.totalorder (!%p634_p8), %s748_s21, 0 }
  0x38   : > { %522 = dma.done.wait (%p754_p9), %s173_s9, 32  }
  0x39   : > { %524 = vsyncadd (%p754_p9), %s173_s9, 4294967264 }
  0x3a   : > { %526 = dma.done.wait (%p614_p1), [#allocation8], 32  }
  0x3b   : > { %528 = vsyncadd (%p614_p1), [#allocation8], 4294967264  ;;  %v207_v0 = vlaneseq  ;;  %s200_s23 = scalar_lea.vmem [#allocation9], %s334_s7  ;;  %s343_s17 = sshll.u32 %s547_s0, 5  ;;  %v204_v1 = vld [vmem:[%s176_s10] sm:$0x3] }
  0x3c   : > { %s229_s11 = sshll.u32 %s200_s23, 4  ;;  %v205_v2 = vld [vmem:[#allocation7] sm:$0x3]  ;;  %s227_s24 = scalar_lea.hbm %s744_s3, %s343_s17  ;;  %s230_s11 = int_to_ptr.vmem [resolvable:$true] %s229_s11 }
  0x3d   : > { %vm209_vm0 = vcmp.lt.s32.totalorder %v207_v0, 256  ;;  %v206_v3 = vadd.f32 %v205_v2, %v204_v1  ;;  %s213_s25 = scalar_lea.sflag [#allocation6], %s689_s5  ;;  %s471_s19 = scalar_lea.vmem %s230_s11, 32 }
  0x3e   : > { %p472_p1 = scmp.ne.s32.totalorder %s230_s11, %s471_s19  ;;  %s559_s26 = smov [#allocation9]  }
  0x3f   : > { %211 = vst.msk [vmem:[%s200_s23] sm:$0x3] %vm209_vm0, %v206_v3  ;;  %s475_s20 = sshll.u32 %s559_s26, 4  ;;  %s476_s20 = int_to_ptr.vmem [resolvable:$false] %s475_s20 }
  0x40   : > { %p473_p8 = pnand %p472_p1, %p666_p0  ;;  %s477_s0 = scalar_lea.vmem %s476_s20, 64 }
  0x41   : > { %p478_p11 = scmp.lt.s32.totalorder %s230_s11, %s476_s20  ;;  %p479_p2 = scmp.lt.s32.totalorder %s477_s0, %s471_s19 }
  0x42   : > { %p474_p13 = pneg %p473_p8 }
  0x43   : > { %p480_p12 = por %p479_p2, %p478_p11 }
  0x45   : > { %p481_p3 = pnand %p480_p12, %p474_p13 }
  0x47   : > { %484 = shalt.err (!%p481_p3)
}
  0x48   : > { %s485_s29 = scalar_lea.hbm %s227_s24, 32  ;;  %s489_s4 = scalar_lea.hbm %s744_s3, 64 }
  0x49   : > { %p486_p5 = scmp.ne.s32.totalorder %s227_s24, %s485_s29  ;;  %p490_p4 = scmp.lt.s32.totalorder %s227_s24, %s744_s3 }
  0x4a   : > { %p491_p10 = scmp.lt.s32.totalorder %s489_s4, %s485_s29 }
  0x4b   : > { %p487_p7 = pnand %p486_p5, %p666_p0 }
  0x4c   : > { %p492_p9 = por %p491_p10, %p490_p4 }
  0x4d   : > { %p488_p6 = pneg %p487_p7 }
  0x4f   : > { %p493_p1 = pnand %p492_p9, %p488_p6 }
  0x51   : > { %496 = shalt.err (!%p493_p1)
}
  0x52   : > { %350 = dma.vmem_to_hbm [thread:$0]  (%p666_p0), %s230_s11, 32, %s227_s24, %s213_s25  }
  0x53 PF: > { %s241_s9 = sand.u32 1, %s535_s12   ;;  %p755_p8 = scmp.ne.s32.totalorder %s749_s22, 0 }
  0x54   : > { %p756_p13 = scmp.ge.s32.totalorder %s555_s16, 2  ;;  %s242_s10 = scalar_lea.sflag [#allocation6], %s241_s9 }
  0x56   : > { %p361_p11 = pnand %p756_p13, %p755_p8 }
  0x58   : > { %p362_p2 = pneg %p361_p11 }
  0x5a   : > { %530 = dma.done.wait (%p362_p2), %s242_s10, 32  }
  0x5b   : > { %532 = vsyncadd (%p362_p2), %s242_s10, 4294967264  ;;  %s21_s16 = sadd.s32 1, %s555_s16   ;;  %s757_s12 = smov %s539_s13 }
  0x5c   : > { %p18_p12 = scmp.ge.s32.totalorder %s21_s16, 4   ;;  %s758_s13 = smov %s543_s14 }
  0x5d   : > { %s759_s14 = smov %s672_s8  ;;  %s760_s0 = smov %s551_s15 }
  0x5e   : > { %s761_s15 = smov %s763_s27  ;;  %20 = sbr.rel (!%p18_p12) target bundleno = 7 (0x7), region = 78 }
  0x63   :  { %247 = vsyncpa [#allocation5], 1 }
  0x64   :  { %249 = vsyncpa [#allocation5 + $0x1], 1 }
  0x65   :  { %250 = vsyncpa [#allocation8], 1 }
  0x66   :  { %251 = vsyncpa [#allocation6], 1 }
  0x67   :  { %253 = vsyncpa [#allocation6 + $0x1], 1 }

</bundles_post_ra>
